<compile_context>
chip_gen: v7x
topology: tpu7x:2x2x1
jax: 0.10.0
libtpu: 0.0.40
codegen_flags: <defaults>
</compile_context>

<pallas_src>
import jax
import jax.numpy as jnp
from jax.experimental import pallas as pl
from jax.experimental.pallas import tpu as pltpu


def _round_up(a, m):
    return ((a + m - 1) // m) * m


# ----------------------------------------------------------------------------
# Kernel
# ----------------------------------------------------------------------------
def resblock_kernel(x_ref, js_ref, wa_ref, wk_ref, o_ref):
    PC = o_ref.shape[-1]      # pack * C lanes (128 in the packed case)
    PR = js_ref.shape[-1]     # pack * R lanes

    x = x_ref[...]            # (TB, PC)
    js = js_ref[...]          # (TB, PR)

    # Static slices of the constant slab (single DMA'd block; slicing is free).
    w2 = wk_ref[0:PC, :]                       # (PC, PC)  fc2 weight, BN2 scale folded
    wj = wk_ref[PC:PC + PR, :]                 # (PR, PC)  shortcut joint_sc weight
    sh1 = wk_ref[PC + PR:PC + PR + 1, :]       # (1, PC)   BN1 shift
    sh2 = wk_ref[PC + PR + 1:PC + PR + 2, :]   # (1, PC)   BN2 shift
    bsc = wk_ref[PC + PR + 2:PC + PR + 3, :]   # (1, PC)   shortcut bias

    # One wide MXU dot: lanes [0:PC)   = fc1 weight (BN1 scale folded in),
    #                   lanes [PC:2PC) = shortcut weight for the x-part.
    m = jnp.dot(x, wa_ref[...], preferred_element_type=jnp.float32)   # (TB, 2*PC)

    # Main branch: fc1 -> bn1(folded) -> relu -> fc2 -> bn2(folded) -> relu.
    h = jnp.maximum(m[:, :PC] + sh1, 0.0)
    h = jnp.dot(h.astype(x.dtype), w2, preferred_element_type=jnp.float32) + sh2
    h = jnp.maximum(h, 0.0)

    # Shortcut: sc(cat([x, joint_sc], -1)) without materializing the concat.
    a = m[:, PC:] + jnp.dot(js, wj, preferred_element_type=jnp.float32) + bsc

    o_ref[...] = (h + a).astype(o_ref.dtype)


# ----------------------------------------------------------------------------
# One-time parameter preparation (hoisted out of the per-call path)
# ----------------------------------------------------------------------------
def prepare_params(params, eps=1e-5, dtype=jnp.float32, pack=None):
    p = params
    C = p["w1"].shape[0]
    R = p["wsc"].shape[1] - C

    if pack is None:
        pack = 128 // C if (C < 128 and 128 % C == 0) else 1

    # Fold BN (eval) + fc bias into per-channel scale/shift:
    #   bn(x @ W.T + b) = x @ (W.T * s) + (b * s + beta - mean * s)
    s1 = p["g1"] / jnp.sqrt(p["v1"] + eps)
    sh1 = p["b1"] * s1 + p["be1"] - p["m1"] * s1
    s2 = p["g2"] / jnp.sqrt(p["v2"] + eps)
    sh2 = p["b2"] * s2 + p["be2"] - p["m2"] * s2

    w1t_s = p["w1"].T * s1[None, :]          # (C, C)  BN1 scale folded into columns
    w2t_s = p["w2"].T * s2[None, :]          # (C, C)  BN2 scale folded
    wscx = p["wsc"][:, :C].T                 # (C, C)  shortcut: x-part
    wscj = p["wsc"][:, C:].T                 # (R, C)  shortcut: joint_sc-part

    eye = jnp.eye(pack, dtype=jnp.float32)
    bd = lambda w: jnp.kron(eye, w)          # block-diag replicate for packed rows

    PC, PR = pack * C, pack * R
    wa = jnp.concatenate([bd(w1t_s), bd(wscx)], axis=1)         # (PC, 2*PC)

    # Constant slab: [ w2 (PC rows) | wj (PR rows) | sh1 | sh2 | bsc | pad ]
    KR = _round_up(PC + PR + 3, 8)
    wk = jnp.zeros((KR, PC), jnp.float32)
    wk = wk.at[0:PC].set(bd(w2t_s))
    wk = wk.at[PC:PC + PR].set(bd(wscj))
    wk = wk.at[PC + PR].set(jnp.tile(sh1, pack))
    wk = wk.at[PC + PR + 1].set(jnp.tile(sh2, pack))
    wk = wk.at[PC + PR + 2].set(jnp.tile(p["bsc"], pack))

    return dict(wa=wa.astype(dtype), wk=wk.astype(dtype), pack=pack)


# ----------------------------------------------------------------------------
# Wrapper
# ----------------------------------------------------------------------------
def resblock_forward(x, joint_sc, prep, tb=1024):
    """tb = packed rows per grid step (1 packed row = `pack` original rows)."""
    B, C = x.shape
    R = joint_sc.shape[-1]
    pack = prep["pack"]
    PC, PR = pack * C, pack * R

    # Pad only when B is not a multiple of the packing factor (rare); the
    # common case avoids the extra HBM read+write a pad/slice would cost.
    Bp = _round_up(B, pack)
    if Bp != B:
        x = jnp.pad(x, ((0, Bp - B), (0, 0)))
        joint_sc = jnp.pad(joint_sc, ((0, Bp - B), (0, 0)))

    N = Bp // pack
    xp = x.reshape(N, PC)            # row-major reshape: no data movement
    jsp = joint_sc.reshape(N, PR)

    # Tile selection: as large as `tb` but always >= 2 grid steps (v7x has two
    # TensorCores; "parallel" splits steps across them).  Ragged final tiles
    # are handled by Pallas partial-block masking (rows independent).
    if N % 8 == 0 and N > 8:
        TB = min(_round_up(tb, 8), _round_up(N // 2, 8), N)
    else:
        TB = N                       # tiny / odd N: single full-extent tile
    n_tiles = pl.cdiv(N, TB)

    in_specs = [
        pl.BlockSpec((TB, PC), lambda i: (i, 0)),              # packed x
        pl.BlockSpec((TB, PR), lambda i: (i, 0)),              # packed joint_sc
        pl.BlockSpec(prep["wa"].shape, lambda i: (0, 0)),      # merged fc1 | sc_x weight
        pl.BlockSpec(prep["wk"].shape, lambda i: (0, 0)),      # constant slab
    ]
    out_spec = pl.BlockSpec((TB, PC), lambda i: (i, 0))

    out = pl.pallas_call(
        resblock_kernel,
        out_shape=jax.ShapeDtypeStruct((N, PC), x.dtype),
        grid_spec=pltpu.PrefetchScalarGridSpec(
            num_scalar_prefetch=0,
            grid=(n_tiles,),
            in_specs=in_specs,
            out_specs=out_spec,
        ),
        compiler_params=pltpu.CompilerParams(
            dimension_semantics=("parallel",)),
    )(xp, jsp, prep["wa"], prep["wk"])

    out = out.reshape(Bp, C)
    return out[:B] if Bp != B else out


# ----------------------------------------------------------------------------
# Parameter init + pure-JAX reference
# ----------------------------------------------------------------------------
def init_params(key, in_channels, res_channels, dtype=jnp.float32):
    C, R = in_channels, res_channels
    ks = jax.random.split(key, 14)
    u = lambda k, shape, bound: jax.random.uniform(k, shape, dtype, -bound, bound)
    bnd_c = 1.0 / jnp.sqrt(C)
    bnd_cr = 1.0 / jnp.sqrt(C + R)
    return dict(
        w1=u(ks[0], (C, C), bnd_c), b1=u(ks[1], (C,), bnd_c),
        w2=u(ks[2], (C, C), bnd_c), b2=u(ks[3], (C,), bnd_c),
        wsc=u(ks[4], (C, C + R), bnd_cr), bsc=u(ks[5], (C,), bnd_cr),
        # BatchNorm1d parameters / running stats (deterministic, nontrivial)
        g1=1.0 + 0.1 * jax.random.normal(ks[6], (C,), dtype),
        be1=0.1 * jax.random.normal(ks[7], (C,), dtype),
        m1=0.05 * jax.random.normal(ks[8], (C,), dtype),
        v1=jax.random.uniform(ks[9], (C,), dtype, 0.5, 1.5),
        g2=1.0 + 0.1 * jax.random.normal(ks[10], (C,), dtype),
        be2=0.1 * jax.random.normal(ks[11], (C,), dtype),
        m2=0.05 * jax.random.normal(ks[12], (C,), dtype),
        v2=jax.random.uniform(ks[13], (C,), dtype, 0.5, 1.5),
    )


def resblock_reference(x, joint_sc, params, eps=1e-5):
    p = params
    h = x @ p["w1"].T + p["b1"]
    h = (h - p["m1"]) / jnp.sqrt(p["v1"] + eps) * p["g1"] + p["be1"]
    h = jnp.maximum(h, 0.0)
    h = h @ p["w2"].T + p["b2"]
    h = (h - p["m2"]) / jnp.sqrt(p["v2"] + eps) * p["g2"] + p["be2"]
    h = jnp.maximum(h, 0.0)
    a = jnp.concatenate([x, joint_sc], axis=-1) @ p["wsc"].T + p["bsc"]
    return h + a


if __name__ == "__main__":
    # C=32 -> PACK=4 (lane-dense 128 lanes); B=512 -> N=128 packed rows,
    # TB=64 -> grid=(2,) parallel steps (exercises multi-tile + v7x path).
    B, C, R = 512, 32, 16
    key = jax.random.PRNGKey(0)
    kx, kj, kp = jax.random.split(key, 3)
    x = jax.random.normal(kx, (B, C), jnp.float32)
    joint_sc = jax.random.normal(kj, (B, R), jnp.float32)
    params = init_params(kp, C, R)
    prep = prepare_params(params)   # one-time fold / transpose / block-diag pack

    out = jax.block_until_ready(resblock_forward(x, joint_sc, prep))

    ref = resblock_reference(x, joint_sc, params)
    assert out.shape == (B, C)
    err = jnp.max(jnp.abs(out - ref))
    assert jnp.allclose(out, ref, atol=1e-4, rtol=1e-4), f"max abs err {err}"
    print("KERNEL_OK")
</pallas_src>

<mosaic_0001>
module attributes {stable_mosaic.version = 11 : i64} {
  func.func @resblock_kernel(%arg0: i32, %arg1: memref<64x128xf32, #tpu.memory_space<vmem>>, %arg2: memref<64x64xf32, #tpu.memory_space<vmem>>, %arg3: memref<128x256xf32, #tpu.memory_space<vmem>>, %arg4: memref<200x128xf32, #tpu.memory_space<vmem>>, %arg5: memref<64x128xf32, #tpu.memory_space<vmem>>) attributes {dimension_semantics = [#tpu.dimension_semantics<parallel>], iteration_bounds = array<i64: 2>, scalar_prefetch = 0 : i64, scratch_operands = 0 : i64, tpu.core_type = #tpu.core_type<tc>, window_params = [{transform_indices = @transform_0, window_bounds = array<i64: 64, 128>}, {transform_indices = @transform_1, window_bounds = array<i64: 64, 64>}, {pipeline_mode = #tpu.pipeline_mode<synchronous>, transform_indices = @transform_2, window_bounds = array<i64: 128, 256>}, {pipeline_mode = #tpu.pipeline_mode<synchronous>, transform_indices = @transform_3, window_bounds = array<i64: 200, 128>}, {transform_indices = @transform_4, window_bounds = array<i64: 64, 128>}]} {
    %c0 = arith.constant 0 : index
    %c0_0 = arith.constant 0 : index
    %0 = vector.load %arg1[%c0, %c0_0] : memref<64x128xf32, #tpu.memory_space<vmem>>, vector<64x128xf32>
    %c0_1 = arith.constant 0 : index
    %c0_2 = arith.constant 0 : index
    %1 = vector.load %arg2[%c0_1, %c0_2] : memref<64x64xf32, #tpu.memory_space<vmem>>, vector<64x64xf32>
    %c0_3 = arith.constant 0 : index
    %c0_4 = arith.constant 0 : index
    %2 = vector.load %arg4[%c0_3, %c0_4] : memref<200x128xf32, #tpu.memory_space<vmem>>, vector<128x128xf32>
    %c128 = arith.constant 128 : index
    %c0_5 = arith.constant 0 : index
    %3 = vector.load %arg4[%c128, %c0_5] : memref<200x128xf32, #tpu.memory_space<vmem>>, vector<64x128xf32>
    %c192 = arith.constant 192 : index
    %c0_6 = arith.constant 0 : index
    %4 = vector.load %arg4[%c192, %c0_6] : memref<200x128xf32, #tpu.memory_space<vmem>>, vector<1x128xf32>
    %c193 = arith.constant 193 : index
    %c0_7 = arith.constant 0 : index
    %5 = vector.load %arg4[%c193, %c0_7] : memref<200x128xf32, #tpu.memory_space<vmem>>, vector<1x128xf32>
    %c194 = arith.constant 194 : index
    %c0_8 = arith.constant 0 : index
    %6 = vector.load %arg4[%c194, %c0_8] : memref<200x128xf32, #tpu.memory_space<vmem>>, vector<1x128xf32>
    %c0_9 = arith.constant 0 : index
    %c0_10 = arith.constant 0 : index
    %7 = vector.load %arg3[%c0_9, %c0_10] : memref<128x256xf32, #tpu.memory_space<vmem>>, vector<128x256xf32>
    %cst = arith.constant dense<0.000000e+00> : vector<64x256xf32>
    %8 = tpu.matmul %0, %7, %cst {dimension_numbers = #tpu.dot_dimension_numbers<[1], [0], [0], [1], [0, 0, 1, 1], [], []>} : vector<64x128xf32>, vector<128x256xf32>, vector<64x256xf32> -> vector<64x256xf32>
    %9 = vector.extract_strided_slice %8 {offsets = [0, 0], sizes = [64, 128], strides = [1, 1]} : vector<64x256xf32> to vector<64x128xf32>
    %10 = vector.broadcast %4 : vector<1x128xf32> to vector<64x128xf32>
    %11 = arith.addf %9, %10 : vector<64x128xf32>
    %cst_11 = arith.constant 0.000000e+00 : f32
    %12 = vector.broadcast %cst_11 : f32 to vector<64x128xf32>
    %13 = arith.maximumf %11, %12 : vector<64x128xf32>
    %cst_12 = arith.constant dense<0.000000e+00> : vector<64x128xf32>
    %14 = tpu.matmul %13, %2, %cst_12 {dimension_numbers = #tpu.dot_dimension_numbers<[1], [0], [0], [1], [0, 0, 1, 1], [], []>} : vector<64x128xf32>, vector<128x128xf32>, vector<64x128xf32> -> vector<64x128xf32>
    %15 = vector.broadcast %5 : vector<1x128xf32> to vector<64x128xf32>
    %16 = arith.addf %14, %15 : vector<64x128xf32>
    %cst_13 = arith.constant 0.000000e+00 : f32
    %17 = vector.broadcast %cst_13 : f32 to vector<64x128xf32>
    %18 = arith.maximumf %16, %17 : vector<64x128xf32>
    %19 = vector.extract_strided_slice %8 {offsets = [0, 128], sizes = [64, 128], strides = [1, 1]} : vector<64x256xf32> to vector<64x128xf32>
    %cst_14 = arith.constant dense<0.000000e+00> : vector<64x128xf32>
    %20 = tpu.matmul %1, %3, %cst_14 {dimension_numbers = #tpu.dot_dimension_numbers<[1], [0], [0], [1], [0, 0, 1, 1], [], []>} : vector<64x64xf32>, vector<64x128xf32>, vector<64x128xf32> -> vector<64x128xf32>
    %21 = arith.addf %19, %20 : vector<64x128xf32>
    %22 = vector.broadcast %6 : vector<1x128xf32> to vector<64x128xf32>
    %23 = arith.addf %21, %22 : vector<64x128xf32>
    %24 = arith.addf %18, %23 : vector<64x128xf32>
    %c0_15 = arith.constant 0 : index
    %c0_16 = arith.constant 0 : index
    %25 = vector.load %arg5[%c0_15, %c0_16] : memref<64x128xf32, #tpu.memory_space<vmem>>, vector<64x128xf32>
    tpu.vector_store %arg5[%c0_15, %c0_16], %24 {strides = array<i32>} : memref<64x128xf32, #tpu.memory_space<vmem>>, vector<64x128xf32>,
    return
  }
  func.func @transform_0(%arg0: i32) -> (i32, i32) {
    %c0_i32 = arith.constant 0 : i32
    %c0_i32_0 = arith.constant 0 : i32
    return %arg0, %c0_i32 : i32, i32
  }
  func.func @transform_1(%arg0: i32) -> (i32, i32) {
    %c0_i32 = arith.constant 0 : i32
    %c0_i32_0 = arith.constant 0 : i32
    return %arg0, %c0_i32 : i32, i32
  }
  func.func @transform_2(%arg0: i32) -> (i32, i32) {
    %c0_i32 = arith.constant 0 : i32
    %c0_i32_0 = arith.constant 0 : i32
    %c0_i32_1 = arith.constant 0 : i32
    return %c0_i32, %c0_i32_0 : i32, i32
  }
  func.func @transform_3(%arg0: i32) -> (i32, i32) {
    %c0_i32 = arith.constant 0 : i32
    %c0_i32_0 = arith.constant 0 : i32
    %c0_i32_1 = arith.constant 0 : i32
    return %c0_i32, %c0_i32_0 : i32, i32
  }
  func.func @transform_4(%arg0: i32) -> (i32, i32) {
    %c0_i32 = arith.constant 0 : i32
    %c0_i32_0 = arith.constant 0 : i32
    return %arg0, %c0_i32 : i32, i32
  }
}

</mosaic_0001>

<bundles_post_ra>
// kernel: tpu_custom_call.1
= control target key start
LH: loop header
LB: loop body
LE: loop exit
PB: predicated region body
PF: predicated region fallthrough
CT: control target
= control target key end

     0   :  { %9 = vsyncpa [#allocation3], 0  ;;  %s1658_s0 = inlined_call_operand.hbm [shape: f32[128,128], index: 0, kind: input, shape index: {}]   ;;  %s1659_s1 = inlined_call_operand.vmem [shape: f32[128,64], index: 1, kind: input, shape index: {}]   ;;  %s1660_s2 = inlined_call_operand.hbm [shape: f32[128,256], index: 2, kind: input, shape index: {}]   ;;  %s1661_s3 = inlined_call_operand.vmem [shape: f32[200,128], index: 3, kind: input, shape index: {}]   ;;  %s1662_s4 = inlined_call_operand.hbm [shape: f32[128,128], index: 4, kind: output, shape index: {}]  }
   0x1   :  { %11 = vsyncpa [#allocation3 + $0x1], 0 }
   0x2   :  { %12 = vsyncpa [#allocation6], 0 }
   0x3   :  { %13 = vsyncpa [#allocation4], 0 }
   0x4   :  { %15 = vsyncpa [#allocation4 + $0x1], 0  ;;  %s1307_s15 = smov 0   ;;  %s1309_s16 = smov 0  }
   0x5   :  { %s1311_s17 = smov 0   ;;  %s1313_s18 = smov 0  }
   0x6 LB: > { %s1328_s19 = sadd.s32 4294967295, %s1270_s18   ;;  %s855_s20 = sadd.s32 4294967294, %s1270_s18   ;;  %s1270_s18 = sphi %s1313_s18, %s1682_s18   ;;  %s1266_s17 = sphi %s1311_s17, %s1681_s17   ;;  %s1262_s16 = sphi %s1309_s16, %s1680_s16   ;;  %s1258_s15 = sphi %s1307_s15, %s1679_s15  }
   0x7   : > { %p41_p0 = scmp.ne.s32.totalorder %s1262_s16, %s1258_s15  ;;  %p1663_p1 = scmp.eq.s32.totalorder %s1328_s19, 0 }
   0x8   : > { %p139_p3 = scmp.eq.s32.totalorder %s855_s20, 1  ;;  %p856_p5 = scmp.ge.s32.totalorder %s1270_s18, 1 }
   0x9   : > { %p1337_p4 = por %p1663_p1, %p41_p0  ;;  %p146_p7 = scmp.lt.s32.totalorder %s1270_s18, 3 }
   0xa   : > { %p1342_p6 = por %p139_p3, %p41_p0  ;;  %s1272_s24 = smov [#allocation5]  }
   0xb   : > { %s1666_s21 = scalar_select %p1337_p4, 1, 0 }
   0xc   : > { %s1667_s22 = scalar_select %p1342_p6, 1, 0 }
   0xd   : > { %p1347_p8 = pnand %p856_p5, %p146_p7  ;;  %s158_s25 = sshll.u32 %s1272_s24, 4  ;;  %s1351_s25 = int_to_ptr.vmem [resolvable:$true] %s158_s25 }
   0xe   : > { %s1363_s27 = sadd.s32 1, %s1270_s18   ;;  %s28_s28 = sadd.s32 1, %s1266_s17 }
   0xf   : > { %s1668_s23 = scalar_select %p1347_p8, 1, 0 }
  0x10   : > { %p1086_p9 = pneg %p1347_p8  ;;  %s25_s29 = ssub.s32 %s1270_s18, %s1363_s27 }
  0x11   : > { %s1142_s6 = scalar_lea.hbm %s1660_s2, 4096 }
  0x12   : > { %p1358_p11 = pnand %p1086_p9, %p1663_p1  ;;  %p1143_p12 = scmp.ne.s32.totalorder %s1660_s2, %s1142_s6 }
  0x13   : > { %p1149_p5 = scmp.lt.u32.totalorder %s1142_s6, %s1660_s2 }
  0x14   : > { %p1144_p13 = pneg %p1358_p11 }
  0x16   : > { %p1145_p0 = pnand %p1144_p13, %p1143_p12 }
  0x18   : > { %p1146_p3 = pneg %p1145_p0 }
  0x1a   : > { %p1151_p7 = pnand %p1149_p5, %p1146_p3 }
  0x1c   : > { %1154 = shalt.err (!%p1151_p7)
}
  0x1d   : > { %s1155_s11 = scalar_lea.vmem %s1351_s25, 4096  ;;  %p1163_p2 = scmp.lt.s32.totalorder %s1351_s25, %s1351_s25 }
  0x1e   : > { %p1156_p9 = scmp.ne.s32.totalorder %s1351_s25, %s1155_s11  ;;  %p1164_p6 = scmp.lt.s32.totalorder %s1155_s11, %s1155_s11 }
  0x20   : > { %p1158_p10 = pnand %p1156_p9, %p1144_p13  ;;  %p1165_p4 = por %p1164_p6, %p1163_p2 }
  0x22   : > { %p1159_p1 = pneg %p1158_p10 }
  0x24   : > { %p1166_p8 = pnand %p1165_p4, %p1159_p1 }
  0x26   : > { %1169 = shalt.err (!%p1166_p8)
}
  0x27   : > { %s1273_s12 = smov 256   ;;  %s1274_s13 = smov 16  }
  0x28   : > { %1089 = dma.hbm_to_vmem [thread:$0]  (!%p1358_p11), %s1660_s2, 4096, %s1351_s25, [#allocation6], %s1273_s12, %s1273_s12, %s1274_s13  }
  0x29   : > { %p26_p2 = scmp.eq.s32.totalorder %s25_s29, 0  ;;  %p35_p1 = scmp.ne.s32.totalorder %s1266_s17, %s1262_s16 }
  0x2a   : > { %p36_p4 = scmp.eq.s32.totalorder %s1270_s18, 0  ;;  %p1099_p6 = scmp.lt.s32.totalorder %s1270_s18, 2 }
  0x2b   : > { %s1394_s24 = scalar_select %p26_p2, %s1266_s17, %s28_s28  }
  0x2c   : > { %p37_p8 = por %p36_p4, %p35_p1  ;;  %p1670_p10 = scmp.eq.s32.totalorder %s1328_s19, 1 }
  0x2d   : > { %s175_s5 = sand.u32 1, %s1266_s17   ;;  %s884_s6 = sshll.u32 %s1270_s18, 10 }
  0x2e   : > { %p1398_p12 = por %p1670_p10, %p35_p1  ;;  %s859_s7 = sshll.u32 %s175_s5, 6 }
  0x2f   : > { %s1407_s9 = scalar_lea.hbm %s1658_s0, %s884_s6  ;;  %s179_s25 = scalar_lea.vmem [#allocation2], %s859_s7 }
  0x30   : > { %s186_s28 = sshll.u32 %s179_s25, 4  ;;  %p1409_p11 = pnand %p1099_p6, %p37_p8  ;;  %s1413_s28 = int_to_ptr.vmem [resolvable:$true] %s186_s28 }
  0x31   : > { %s1415_s10 = scalar_lea.sflag [#allocation3], %s175_s5  ;;  %s1170_s11 = scalar_lea.hbm %s1407_s9, 1024 }
  0x32   : > { %p1171_p13 = scmp.ne.s32.totalorder %s1407_s9, %s1170_s11  ;;  %p1172_p0 = pneg %p1409_p11 }
  0x33   : > { %s1175_s14 = scalar_lea.hbm %s1658_s0, 2048  ;;  %p1176_p7 = scmp.lt.u32.totalorder %s1407_s9, %s1658_s0 }
  0x34   : > { %p1173_p3 = pnand %p1172_p0, %p1171_p13  ;;  %p1177_p9 = scmp.lt.u32.totalorder %s1175_s14, %s1170_s11 }
  0x35   : > { %p1179_p1 = scmp.lt.u32.totalorder %s1170_s11, %s1407_s9 }
  0x36   : > { %p1174_p5 = pneg %p1173_p3  ;;  %p1178_p2 = por %p1177_p9, %p1176_p7 }
  0x38   : > { %p1180_p4 = por %p1179_p1, %p1178_p2 }
  0x3a   : > { %p1181_p6 = pnand %p1180_p4, %p1174_p5 }
  0x3c   : > { %1184 = shalt.err (!%p1181_p6)
}
  0x3d   : > { %s1185_s5 = scalar_lea.vmem %s1413_s28, 1024  ;;  %s1275_s7 = smov [#allocation2]  }
  0x3e   : > { %p1186_p8 = scmp.ne.s32.totalorder %s1413_s28, %s1185_s5  ;;  %s1190_s26 = sshll.u32 %s1275_s7, 4  ;;  %s1191_s26 = int_to_ptr.vmem [resolvable:$false] %s1190_s26 }
  0x3f   : > { %s1192_s8 = scalar_lea.vmem %s1191_s26, 2048  ;;  %p1193_p3 = scmp.lt.s32.totalorder %s1413_s28, %s1191_s26 }
  0x40   : > { %p1188_p10 = pnand %p1186_p8, %p1172_p0  ;;  %p1194_p7 = scmp.lt.s32.totalorder %s1192_s8, %s1185_s5 }
  0x42   : > { %p1189_p13 = pneg %p1188_p10  ;;  %p1195_p9 = por %p1194_p7, %p1193_p3 }
  0x44   : > { %p1196_p2 = pnand %p1195_p9, %p1189_p13 }
  0x46   : > { %1199 = shalt.err (!%p1196_p2)
}
  0x47   : > { %s1276_s25 = smov 128   ;;  %s1277_s11 = smov 8  }
  0x48   : > { %1093 = dma.hbm_to_vmem [thread:$0]  (!%p1409_p11), %s1407_s9, 1024, %s1413_s28, %s1415_s10, %s1276_s25, %s1276_s25, %s1277_s11  }
  0x49   : > { %p1673_p0 = scmp.ne.s32.totalorder %s1668_s23, 0 }
  0x4a   : > { %s1446_s12 = sand.u32 (!%p1673_p0), 1, %s1262_s16   ;;  %p1674_p5 = scmp.ne.s32.totalorder (!%p1673_p0), %s1666_s21, 0 }
  0x4b   : > { %207 = sbr.rel (%p1673_p0) target bundleno = 615 (0x267), region = 36  ;;  %s863_s13 = sshll.u32 (!%p1673_p0), %s1446_s12, 6 }
  0x4c   : > { %s210_s14 = scalar_lea.sflag (!%p1673_p0), [#allocation3], %s1446_s12  ;;  %s1452_s20 = scalar_lea.vmem (!%p1673_p0), [#allocation2], %s863_s13 }
  0x52   : > { %1245 = dma.done.wait (%p1674_p5), %s210_s14, 1024  }
  0x53   : > { %1247 = vsyncadd (%p1674_p5), %s210_s14, 4294966272  ;;  %p1675_p11 = scmp.eq.s32.totalorder %s1328_s19, 0 }
  0x55   : > { %1249 = dma.done.wait (%p1675_p11), [#allocation6], 4096   ;;  %p1676_p1 = pmov %p1675_p11 }
  0x56   : > { %v1278_v0 = vmov 0.0   ;;  %v299_v1 = vld [vmem:[#allocation5 + $0x8] sm:$0xff]  ;;  %v301_v2 = vld [vmem:[#allocation5 + $0x18] sm:$0xff]  ;;  %v298_v3 = vld [vmem:[#allocation5] sm:$0xff]  ;;  %s866_s6 = sshll.u32 %s1328_s19, 3  ;;  %vm580_vm0 = vcmask 523264  }
  0x57   : > { %1251 = vsyncadd (%p1676_p1), [#allocation6], 4294963200  ;;  %394 = vmatprep.mubr.f32.mxu0 %v1278_v0  ;;  %v998_v4 = vpack.c.bf16 %v301_v2, %v299_v1  ;;  %v300_v5 = vld [vmem:[#allocation5 + $0x10] sm:$0xff]  ;;  %v303_v6 = vld [vmem:[#allocation5 + $0x28] sm:$0xff]  ;;  %p249_p4 = scmp.lt.s32.totalorder %s866_s6, 15  ;;  %s1593_s23 = scalar_lea.vmem [#allocation7], %s863_s13 }
  0x58   : > { %v305_v7 = vld [vmem:[#allocation5 + $0x38] sm:$0xff]  ;;  %v1000_v8 = vpack.c.bf16 %v300_v5, %v298_v3  ;;  %v302_v10 = vld [vmem:[#allocation5 + $0x20] sm:$0xff]  ;;  %v304_v11 = vld [vmem:[#allocation5 + $0x30] sm:$0xff]  ;;  %s885_s13 = sshll.u32 %s1328_s19, 10  ;;  %s760_s9 = sshll.u32 %s1593_s23, 4  ;;  %s1612_s9 = int_to_ptr.vmem [resolvable:$true] %s760_s9 }
  0x59   : > { %v1002_v9 = vpack.c.bf16 %v305_v7, %v303_v6  ;;  %v307_v12 = vld [vmem:[#allocation5 + $0x48] sm:$0xff]  ;;  %999 = vmatprep.subr.bf16.mxu0 %v998_v4  ;;  %v309_v13 = vld [vmem:[#allocation5 + $0x58] sm:$0xff]  ;;  %v1004_v14 = vpack.c.bf16 %v304_v11, %v302_v10  ;;  %v306_v16 = vld [vmem:[#allocation5 + $0x40] sm:$0xff]  ;;  %s1684_s6 = smov (!%p249_p4, %s866_s6), 15  ;;  %s1610_s29 = scalar_lea.hbm %s1662_s4, %s885_s13 }
  0x5a   : > { %1001 = vmatpush1.bf16.msra.mxu0 %v1000_v8  ;;  %v1006_v15 = vpack.c.bf16 %v309_v13, %v307_v12  ;;  %v308_v17 = vld [vmem:[#allocation5 + $0x50] sm:$0xff]  ;;  %v311_v18 = vld [vmem:[#allocation5 + $0x68] sm:$0xff]  ;;  %v313_v19 = vld [vmem:[#allocation5 + $0x78] sm:$0xff]  ;;  %s867_s5 = sshll.u32 %s1684_s6, 3  ;;  %s747_s19 = scalar_lea.sflag [#allocation4], %s1446_s12 }
  0x5b   : > { %1003 = vmatprep.subr.bf16.mxu0 %v1002_v9  ;;  %v1008_v20 = vpack.c.bf16 %v308_v17, %v306_v16  ;;  %v1010_v21 = vpack.c.bf16 %v313_v19, %v311_v18  ;;  %v310_v22 = vld [vmem:[#allocation5 + $0x60] sm:$0xff]  ;;  %v312_v23 = vld [vmem:[#allocation5 + $0x70] sm:$0xff]  ;;  %v315_v24 = vld [vmem:[#allocation5 + $0x88] sm:$0xff]  ;;  %s252_s8 = scalar_lea.vmem %s1659_s1, %s867_s5  ;;  %s1200_s10 = scalar_lea.vmem %s1612_s9, 1024 }
  0x5c   : > { %v317_v25 = vld [vmem:[#allocation5 + $0x98] sm:$0xff]  ;;  %v1012_v26 = vpack.c.bf16 %v312_v23, %v310_v22  ;;  %v314_v27 = vld [vmem:[#allocation5 + $0x80] sm:$0xff]  ;;  %v316_v28 = vld [vmem:[#allocation5 + $0x90] sm:$0xff]  ;;  %p1201_p6 = scmp.ne.s32.totalorder %s1612_s9, %s1200_s10  ;;  %s1279_s6 = smov [#allocation7]  }
  0x5d   : > { %v1014_v29 = vpack.c.bf16 %v317_v25, %v315_v24  ;;  %v319_v30 = vld [vmem:[#allocation5 + $0xa8] sm:$0xff]  ;;  %v271_v31 = vld [vmem:[%s1661_s3] sm:$0xff]  ;;  %v321_v33 = vld [vmem:[#allocation5 + $0xb8] sm:$0xff]  ;;  %v1016_v40 = vpack.c.bf16 %v316_v28, %v314_v27  ;;  %s1204_s5 = sshll.u32 %s1279_s6, 4  ;;  %s1205_s5 = int_to_ptr.vmem [resolvable:$false] %s1204_s5 }
  0x5e   : > { %1005 = vmatpush1.bf16.msra.mxu0 %v1004_v14  ;;  %v272_v32 = vld [vmem:[%s1661_s3 + $0x8] sm:$0xff]  ;;  %v273_v35 = vld [vmem:[%s1661_s3 + $0x10] sm:$0xff]  ;;  %v274_v36 = vld [vmem:[%s1661_s3 + $0x18] sm:$0xff]  ;;  %v1018_v41 = vpack.c.bf16 %v321_v33, %v319_v30  ;;  %p1202_p8 = pnand %p1201_p6, %p1398_p12  ;;  %s1206_s7 = scalar_lea.vmem %s1205_s5, 2048 }
  0x5f   : > { %1007 = vmatprep.subr.bf16.mxu0 %v1006_v15  ;;  %v1030_v34 = vpack.c.bf16 %v272_v32, %v271_v31  ;;  %v1034_v37 = vpack.c.bf16 %v274_v36, %v273_v35  ;;  %v275_v38 = vld [vmem:[%s1661_s3 + $0x20] sm:$0xff]  ;;  %v276_v39 = vld [vmem:[%s1661_s3 + $0x28] sm:$0xff]  ;;  %v320_v43 = vld [vmem:[#allocation5 + $0xb0] sm:$0xff]  ;;  %p1207_p13 = scmp.lt.s32.totalorder %s1612_s9, %s1205_s5  ;;  %p1208_p3 = scmp.lt.s32.totalorder %s1206_s7, %s1200_s10 }
  0x60   : > { %v318_v42 = vld [vmem:[#allocation5 + $0xa0] sm:$0xff]  ;;  %v323_v44 = vld [vmem:[#allocation5 + $0xc8] sm:$0xff]  ;;  %v325_v45 = vld [vmem:[#allocation5 + $0xd8] sm:$0xff]  ;;  %v1038_v46 = vpack.c.bf16 %v276_v39, %v275_v38  ;;  %p1203_p10 = pneg %p1202_p8 }
  0x61   : > { %1031 = vmatprep.subr.bf16.mxu1 %v1030_v34  ;;  %v277_v47 = vld [vmem:[%s1661_s3 + $0x30] sm:$0xff]  ;;  %v278_v48 = vld [vmem:[%s1661_s3 + $0x38] sm:$0xff]  ;;  %v1020_v49 = vpack.c.bf16 %v320_v43, %v318_v42  ;;  %v1022_v50 = vpack.c.bf16 %v325_v45, %v323_v44  ;;  %v322_v51 = vld [vmem:[#allocation5 + $0xc0] sm:$0xff]  ;;  %p1209_p7 = por %p1208_p3, %p1207_p13 }
  0x62   : > { %1009 = vmatpush1.bf16.msra.mxu0 %v1008_v20  ;;  %1033 = vmatpush3.bf16.msra.mxu1 %v1030_v34  ;;  %v324_v52 = vld [vmem:[#allocation5 + $0xd0] sm:$0xff]  ;;  %v327_v53 = vld [vmem:[#allocation5 + $0xe8] sm:$0xff]  ;;  %v329_v54 = vld [vmem:[#allocation5 + $0xf8] sm:$0xff]  ;;  %v1042_v55 = vpack.c.bf16 %v278_v48, %v277_v47 }
  0x63   : > { %1011 = vmatprep.subr.bf16.mxu0 %v1010_v21  ;;  %1035 = vmatprep.subr.bf16.mxu1 %v1034_v37  ;;  %v279_v56 = vld [vmem:[%s1661_s3 + $0x40] sm:$0xff]  ;;  %v280_v57 = vld [vmem:[%s1661_s3 + $0x48] sm:$0xff]  ;;  %v1024_v58 = vpack.c.bf16 %v324_v52, %v322_v51  ;;  %v1026_v59 = vpack.c.bf16 %v329_v54, %v327_v53  ;;  %v328_v61 = vld [vmem:[#allocation5 + $0xf0] sm:$0xff]  ;;  %p1210_p9 = pnand %p1209_p7, %p1203_p10 }
  0x64   : > { %v326_v60 = vld [vmem:[#allocation5 + $0xe0] sm:$0xff]  ;;  %v1046_v62 = vpack.c.bf16 %v280_v57, %v279_v56  ;;  %v281_v63 = vld [vmem:[%s1661_s3 + $0x50] sm:$0xff]  ;;  %v282_v1 = vld [vmem:[%s1661_s3 + $0x58] sm:$0xff] }
  0x65   : > { %v1028_v2 = vpack.c.bf16 %v328_v61, %v326_v60  ;;  %v1050_v3 = vpack.c.bf16 %v282_v1, %v281_v63  ;;  %v255_v4 = vld [vmem:[%s1452_s20] sm:$0xff]  ;;  %v256_v5 = vld [vmem:[%s1452_s20 + $0x8] sm:$0xff]  ;;  %v257_v6 = vld [vmem:[%s1452_s20 + $0x10] sm:$0xff] }
  0x66   : > { %1013 = vmatpush1.bf16.msra.mxu0 %v1012_v26  ;;  %1037 = vmatpush3.bf16.msra.mxu1 %v1034_v37  ;;  %v258_v7 = vld [vmem:[%s1452_s20 + $0x18] sm:$0xff]  ;;  %v259_v8 = vld [vmem:[%s1452_s20 + $0x20] sm:$0xff]  ;;  %v260_v9 = vld [vmem:[%s1452_s20 + $0x28] sm:$0xff] }
  0x67   : > { %1015 = vmatprep.subr.bf16.mxu0 %v1014_v29  ;;  %1039 = vmatprep.subr.bf16.mxu1 %v1038_v46  ;;  %v261_v10 = vld [vmem:[%s1452_s20 + $0x30] sm:$0xff]  ;;  %v262_v11 = vld [vmem:[%s1452_s20 + $0x38] sm:$0xff]  ;;  %v283_v12 = vld [vmem:[%s1661_s3 + $0x60] sm:$0xff] }
  0x68   : > { %v284_v13 = vld [vmem:[%s1661_s3 + $0x68] sm:$0xff]  ;;  %v285_v15 = vld [vmem:[%s1661_s3 + $0x70] sm:$0xff]  ;;  %v287_v17 = vld [vmem:[%s1661_s3 + $0x80] sm:$0xff] }
  0x69   : > { %v1054_v14 = vpack.c.bf16 %v284_v13, %v283_v12  ;;  %v288_v18 = vld [vmem:[%s1661_s3 + $0x88] sm:$0xff]  ;;  %v868_v20 = vld [vmem:[%s1661_s3 + $0xc0] ss:$0 sm:$0xff]  ;;  %v289_v26 = vld [vmem:[%s1661_s3 + $0x90] sm:$0xff] }
  0x6a   : > { %1017 = vmatpush1.bf16.msra.mxu0 %v1016_v40  ;;  %1041 = vmatpush3.bf16.msra.mxu1 %v1038_v46  ;;  %v1062_v19 = vpack.c.bf16 %v288_v18, %v287_v17  ;;  %v290_v27 = vld [vmem:[%s1661_s3 + $0x98] sm:$0xff]  ;;  %v291_v33 = vld [vmem:[%s1661_s3 + $0xa0] sm:$0xff]  ;;  %v292_v34 = vld [vmem:[%s1661_s3 + $0xa8] sm:$0xff] }
  0x6b   : > { %1019 = vmatprep.subr.bf16.mxu0 %v1018_v41  ;;  %1043 = vmatprep.subr.bf16.mxu1 %v1042_v55  ;;  %v1066_v31 = vpack.c.bf16 %v290_v27, %v289_v26  ;;  %v1070_v38 = vpack.c.bf16 %v292_v34, %v291_v33  ;;  %v293_v40 = vld [vmem:[%s1661_s3 + $0xb0] sm:$0xff]  ;;  %v294_v41 = vld [vmem:[%s1661_s3 + $0xb8] sm:$0xff]  ;;  %v264_v63 = vld [vmem:[%s252_s8 + $0x8] sm:$0xff] }
  0x6c   : > { %v1074_v45 = vpack.c.bf16 %v294_v41, %v293_v40  ;;  %v265_v1 = vld [vmem:[%s252_s8 + $0x10] sm:$0xff]  ;;  %v869_v13 = vld [vmem:[%s1661_s3 + $0xc1] ss:$0 sm:$0xff]  ;;  %v878_v17 = vld [vmem:[%s1661_s3 + $0xc2] ss:$0 sm:$0xff] }
  0x6e   : > { %1021 = vmatpush1.bf16.msra.mxu0 %v1020_v49  ;;  %1045 = vmatpush3.bf16.msra.mxu1 %v1042_v55 }
  0x6f   : > { %1023 = vmatprep.subr.bf16.mxu0 %v1022_v50  ;;  %1047 = vmatprep.subr.bf16.mxu1 %v1046_v62 }
  0x72   : > { %1025 = vmatpush1.bf16.msra.mxu0 %v1024_v58  ;;  %1049 = vmatpush3.bf16.msra.mxu1 %v1046_v62  ;;  %v263_v62 = vld [vmem:[%s252_s8] sm:$0xff] }
  0x73   : > { %1027 = vmatprep.subr.bf16.mxu0 %v1026_v59  ;;  %1051 = vmatprep.subr.bf16.mxu1 %v1050_v3 }
  0x76   : > { %1029 = vmatpush1.bf16.msra.mxu0 %v1028_v2  ;;  %1053 = vmatpush3.bf16.msra.mxu1 %v1050_v3  ;;  %v266_v2 = vld [vmem:[%s252_s8 + $0x18] sm:$0xff]  ;;  %v267_v3 = vld [vmem:[%s252_s8 + $0x20] sm:$0xff] }
  0x77   : > { %1055 = vmatprep.subr.bf16.mxu1 %v1054_v14 }
  0x79   : > { %395 = vmatmul.mubr.f32.vlgmr.msra.gmra.mrb[0].mxu0 %v255_v4  ;;  %v268_v4 = vld [vmem:[%s252_s8 + $0x28] sm:$0xff] }
  0x7a   : > { %400 = vmatprep.mubr.f32.mxu0 %v1278_v0  ;;  %1057 = vmatpush3.bf16.msra.mxu1 %v1054_v14 }
  0x7d   : > { %401 = vmatmul.mubr.f32.gmra.mrb[2].mxu0 %v256_v5  ;;  %v269_v5 = vld [vmem:[%s252_s8 + $0x30] sm:$0xff] }
  0x7e   : > { %406 = vmatprep.mubr.f32.mxu0 %v1278_v0 }
  0x81   : > { %407 = vmatmul.mubr.f32.gmra.mrb[4].mxu0 %v257_v6  ;;  %v270_v6 = vld [vmem:[%s252_s8 + $0x38] sm:$0xff] }
  0x82   : > { %412 = vmatprep.mubr.f32.mxu0 %v1278_v0 }
  0x85   : > { %413 = vmatmul.mubr.f32.gmra.mrb[6].mxu0 %v258_v7 }
  0x86   : > { %418 = vmatprep.mubr.f32.mxu0 %v1278_v0 }
  0x89   : > { %419 = vmatmul.mubr.f32.gmra.mrb[8].mxu0 %v259_v8 }
  0x8a   : > { %424 = vmatprep.mubr.f32.mxu0 %v1278_v0 }
  0x8d   : > { %425 = vmatmul.mubr.f32.gmra.mrb[10].mxu0 %v260_v9 }
  0x8e   : > { %430 = vmatprep.mubr.f32.mxu0 %v1278_v0 }
  0x91   : > { %431 = vmatmul.mubr.f32.gmra.mrb[12].mxu0 %v261_v10 }
  0x92   : > { %436 = vmatprep.mubr.f32.mxu0 %v1278_v0  ;;  %v286_v0 = vld [vmem:[%s1661_s3 + $0x78] sm:$0xff] }
  0x93   : > { %v1058_v16 = vpack.c.bf16 %v286_v0, %v285_v15 }
  0x95   : > { %437 = vmatmul.mubr.f32.gmra.mrb[14].mxu0 %v262_v11  ;;  %1059 = vmatprep.subr.bf16.mxu1 %v1058_v16 }
  0x96   : > { %1061 = vmatpush3.bf16.msra.mxu1 %v1058_v16 }
  0x97   : > { %1063 = vmatprep.subr.bf16.mxu1 %v1062_v19 }
 0x14c   : > { %v396_v21 = vpop.f32.mrb[0].mxu0 }
 0x14d   : > { %v1535_v22 = vpop.f32.mrb[1].mxu0  ;;  %v447_v23 = vadd.f32 %v868_v20, %v396_v21 }
 0x14f   : > { %v455_v24 = vmax.f32 %v447_v23, 0.0 }
 0x150   : > { %v402_v25 = vpop.f32.mrb[2].mxu0 }
 0x151   : > { %v448_v28 = vadd.f32 %v868_v20, %v402_v25  ;;  %v1543_v29 = vpop.f32.mrb[3].mxu0  ;;  %958 = vmatprep.mubr.f32.mxu1 %v455_v24 }
 0x153   : > { %v456_v30 = vmax.f32 %v448_v28, 0.0 }
 0x154   : > { %v408_v32 = vpop.f32.mrb[4].mxu0 }
 0x155   : > { %v449_v35 = vadd.f32 %v868_v20, %v408_v32  ;;  %v1551_v36 = vpop.f32.mrb[5].mxu0  ;;  %959 = vmatmul.mubr.f32.vlgmr.msra.gmra.mrb[0].mxu1 %v456_v30 }
 0x156   : > { %1065 = vmatpush3.bf16.msra.mxu1 %v1062_v19 }
 0x157   : > { %v457_v37 = vmax.f32 %v449_v35, 0.0  ;;  %1067 = vmatprep.subr.bf16.mxu1 %v1066_v31 }
 0x158   : > { %v414_v39 = vpop.f32.mrb[6].mxu0 }
 0x159   : > { %v450_v42 = vadd.f32 %v868_v20, %v414_v39  ;;  %v1559_v43 = vpop.f32.mrb[7].mxu0  ;;  %961 = vmatprep.mubr.f32.mxu1 %v457_v37 }
 0x15a   : > { %1069 = vmatpush3.bf16.msra.mxu1 %v1066_v31 }
 0x15b   : > { %v458_v44 = vmax.f32 %v450_v42, 0.0  ;;  %1071 = vmatprep.subr.bf16.mxu1 %v1070_v38 }
 0x15c   : > { %v420_v46 = vpop.f32.mrb[8].mxu0 }
 0x15d   : > { %v451_v47 = vadd.f32 %v868_v20, %v420_v46  ;;  %v1562_v48 = vpop.f32.mrb[9].mxu0  ;;  %962 = vmatmul.mubr.f32.gmra.mrb[2].mxu1 %v458_v44 }
 0x15e   : > { %1073 = vmatpush3.bf16.msra.mxu1 %v1070_v38 }
 0x15f   : > { %v459_v49 = vmax.f32 %v451_v47, 0.0  ;;  %1075 = vmatprep.subr.bf16.mxu1 %v1074_v45 }
 0x160   : > { %v426_v50 = vpop.f32.mrb[10].mxu0 }
 0x161   : > { %v452_v51 = vadd.f32 %v868_v20, %v426_v50  ;;  %v1564_v52 = vpop.f32.mrb[11].mxu0  ;;  %964 = vmatprep.mubr.f32.mxu1 %v459_v49 }
 0x162   : > { %1077 = vmatpush3.bf16.msra.mxu1 %v1074_v45 }
 0x163   : > { %v460_v53 = vmax.f32 %v452_v51, 0.0 }
 0x164   : > { %v432_v54 = vpop.f32.mrb[12].mxu0 }
 0x165   : > { %v453_v55 = vadd.f32 %v868_v20, %v432_v54  ;;  %v1566_v56 = vpop.f32.mrb[13].mxu0  ;;  %965 = vmatmul.mubr.f32.gmra.mrb[4].mxu1 %v460_v53 }
 0x167   : > { %v461_v57 = vmax.f32 %v453_v55, 0.0 }
 0x168   : > { %v438_v58 = vpop.f32.mrb[14].mxu0 }
 0x169   : > { %v454_v59 = vadd.f32 %v868_v20, %v438_v58  ;;  %v1571_v60 = vpop.f32.mrb[15].mxu0  ;;  %967 = vmatprep.mubr.f32.mxu1 %v461_v57 }
 0x16b   : > { %v462_v61 = vmax.f32 %v454_v59, 0.0 }
 0x16d   : > { %968 = vmatmul.mubr.f32.gmra.mrb[6].mxu1 %v462_v61 }
 0x16e   : > { %986 = vmatprep.mubr.msk.f32.mxu1 %vm580_vm0, %v263_v62 }
 0x171   : > { %987 = vmatmul.mubr.msk.f32.vlgmr.msra.gmra.mrb[8].mxu1 %vm580_vm0, %v264_v63 }
 0x172   : > { %989 = vmatprep.mubr.msk.f32.mxu1 %vm580_vm0, %v265_v1 }
 0x175   : > { %990 = vmatmul.mubr.msk.f32.gmra.mrb[10].mxu1 %vm580_vm0, %v266_v2 }
 0x176   : > { %992 = vmatprep.mubr.msk.f32.mxu1 %vm580_vm0, %v267_v3 }
 0x179   : > { %993 = vmatmul.mubr.msk.f32.gmra.mrb[12].mxu1 %vm580_vm0, %v268_v4 }
 0x17a   : > { %995 = vmatprep.mubr.msk.f32.mxu1 %vm580_vm0, %v269_v5 }
 0x17d   : > { %996 = vmatmul.mubr.msk.f32.gmra.mrb[14].mxu1 %vm580_vm0, %v270_v6 }
 0x228   : > { %v960_v7 = vpop.f32.mrb[0].mxu1 }
 0x229   : > { %v533_v8 = vpop.f32.mrb[1].mxu1  ;;  %v539_v0 = vadd.f32 %v960_v7, %v869_v13 }
 0x22a   : > { %v534_v16 = vadd.f32 %v869_v13, %v533_v8 }
 0x22b   : > { %v573_v23 = vmax.f32 %v539_v0, 0.0 }
 0x22c   : > { %v572_v26 = vmax.f32 %v534_v16, 0.0 }
 0x230   : > { %v963_v9 = vpop.f32.mrb[2].mxu1 }
 0x231   : > { %v543_v10 = vpop.f32.mrb[3].mxu1  ;;  %v549_v24 = vadd.f32 %v963_v9, %v869_v13 }
 0x232   : > { %v544_v27 = vadd.f32 %v869_v13, %v543_v10 }
 0x233   : > { %v575_v37 = vmax.f32 %v549_v24, 0.0 }
 0x234   : > { %v574_v38 = vmax.f32 %v544_v27, 0.0 }
 0x238   : > { %v966_v11 = vpop.f32.mrb[4].mxu1 }
 0x239   : > { %v553_v12 = vpop.f32.mrb[5].mxu1 }
 0x23a   : > { %v554_v39 = vadd.f32 %v869_v13, %v553_v12 }
 0x23c   : > { %v576_v50 = vmax.f32 %v554_v39, 0.0 }
 0x240   : > { %v969_v14 = vpop.f32.mrb[6].mxu1 }
 0x241   : > { %v563_v15 = vpop.f32.mrb[7].mxu1  ;;  %v569_v47 = vadd.f32 %v969_v14, %v869_v13 }
 0x242   : > { %v564_v51 = vadd.f32 %v869_v13, %v563_v15 }
 0x243   : > { %v579_v59 = vmax.f32 %v569_v47, 0.0 }
 0x244   : > { %v988_v18 = vpop.f32.mrb[8].mxu1  ;;  %v578_v62 = vmax.f32 %v564_v51, 0.0 }
 0x245   : > { %v711_v19 = vadd.f32 %v988_v18, %v1543_v29  ;;  %v671_v20 = vpop.f32.mrb[9].mxu1  ;;  %v559_v29 = vadd.f32 %v966_v11, %v869_v13 }
 0x246   : > { %v710_v21 = vadd.f32 %v671_v20, %v1535_v22 }
 0x247   : > { %v723_v25 = vadd.f32 %v878_v17, %v711_v19  ;;  %v577_v46 = vmax.f32 %v559_v29, 0.0 }
 0x248   : > { %v722_v28 = vadd.f32 %v878_v17, %v710_v21  ;;  %v991_v30 = vpop.f32.mrb[10].mxu1 }
 0x249   : > { %v731_v31 = vadd.f32 %v723_v25, %v573_v23  ;;  %v713_v32 = vadd.f32 %v991_v30, %v1559_v43  ;;  %v681_v33 = vpop.f32.mrb[11].mxu1 }
 0x24a   : > { %v730_v34 = vadd.f32 %v722_v28, %v572_v26  ;;  %v712_v35 = vadd.f32 %v681_v33, %v1551_v36 }
 0x24b   : > { %739 = vst [vmem:[%s1593_s23 + $0x8] sm:$0xff] %v731_v31  ;;  %v725_v22 = vadd.f32 %v878_v17, %v713_v32 }
 0x24c   : > { %738 = vst [vmem:[%s1593_s23] sm:$0xff] %v730_v34  ;;  %v724_v40 = vadd.f32 %v878_v17, %v712_v35  ;;  %v994_v41 = vpop.f32.mrb[12].mxu1 }
 0x24d   : > { %v733_v42 = vadd.f32 %v725_v22, %v575_v37  ;;  %v715_v43 = vadd.f32 %v994_v41, %v1564_v52  ;;  %v691_v36 = vpop.f32.mrb[13].mxu1 }
 0x24e   : > { %v732_v44 = vadd.f32 %v724_v40, %v574_v38  ;;  %v714_v45 = vadd.f32 %v691_v36, %v1562_v48 }
 0x24f   : > { %741 = vst [vmem:[%s1593_s23 + $0x18] sm:$0xff] %v733_v42  ;;  %v727_v49 = vadd.f32 %v878_v17, %v715_v43 }
 0x250   : > { %740 = vst [vmem:[%s1593_s23 + $0x10] sm:$0xff] %v732_v44  ;;  %v726_v53 = vadd.f32 %v878_v17, %v714_v45  ;;  %v997_v54 = vpop.f32.mrb[14].mxu1 }
 0x251   : > { %v735_v55 = vadd.f32 %v727_v49, %v577_v46  ;;  %v717_v52 = vadd.f32 %v997_v54, %v1571_v60  ;;  %v701_v57 = vpop.f32.mrb[15].mxu1 }
 0x252   : > { %v734_v58 = vadd.f32 %v726_v53, %v576_v50  ;;  %v716_v48 = vadd.f32 %v701_v57, %v1566_v56 }
 0x253   : > { %743 = vst [vmem:[%s1593_s23 + $0x28] sm:$0xff] %v735_v55  ;;  %v729_v61 = vadd.f32 %v878_v17, %v717_v52 }
 0x254   : > { %742 = vst [vmem:[%s1593_s23 + $0x20] sm:$0xff] %v734_v58  ;;  %v728_v63 = vadd.f32 %v878_v17, %v716_v48 }
 0x255   : > { %v737_v1 = vadd.f32 %v729_v61, %v579_v59 }
 0x256   : > { %v736_v56 = vadd.f32 %v728_v63, %v578_v62 }
 0x257   : > { %745 = vst [vmem:[%s1593_s23 + $0x38] sm:$0xff] %v737_v1 }
 0x258   : > { %744 = vst [vmem:[%s1593_s23 + $0x30] sm:$0xff] %v736_v56 }
 0x259   : > { %1213 = shalt.err (!%p1210_p9)
}
 0x25a   : > { %s1214_s26 = scalar_lea.hbm %s1610_s29, 1024  ;;  %s1218_s11 = scalar_lea.hbm %s1662_s4, 2048 }
 0x25b   : > { %p1215_p2 = scmp.ne.s32.totalorder %s1610_s29, %s1214_s26  ;;  %p1219_p11 = scmp.lt.u32.totalorder %s1610_s29, %s1662_s4 }
 0x25c   : > { %p1220_p1 = scmp.lt.u32.totalorder %s1218_s11, %s1214_s26  ;;  %p1222_p6 = scmp.lt.u32.totalorder %s1214_s26, %s1610_s29 }
 0x25d   : > { %p1216_p0 = pnand %p1215_p2, %p1398_p12 }
 0x25e   : > { %p1221_p4 = por %p1220_p1, %p1219_p11 }
 0x25f   : > { %p1217_p5 = pneg %p1216_p0 }
 0x260   : > { %p1223_p8 = por %p1222_p6, %p1221_p4 }
 0x262   : > { %p1224_p10 = pnand %p1223_p8, %p1217_p5 }
 0x264   : > { %1227 = shalt.err (!%p1224_p10)
}
 0x265   : > { %s1280_s23 = smov 128   ;;  %s1281_s13 = smov 8  }
 0x266   : > { %1084 = dma.vmem_to_hbm [thread:$0]  (%p1398_p12), %s1612_s9, 1024, %s1610_s29, %s747_s19, %s1280_s23, %s1280_s23, %s1281_s13  }
 0x267 PF: > { %s775_s28 = sand.u32 1, %s1258_s15   ;;  %p1677_p13 = scmp.ne.s32.totalorder %s1667_s22, 0 }
 0x268   : > { %p1678_p3 = scmp.ge.s32.totalorder %s1270_s18, 2  ;;  %s776_s20 = scalar_lea.sflag [#allocation4], %s775_s28 }
 0x26a   : > { %p1095_p7 = pnand %p1678_p3, %p1677_p13 }
 0x26c   : > { %1253 = dma.done.wait (!%p1095_p7), %s776_s20, 1024  }
 0x26d   : > { %1255 = vsyncadd (!%p1095_p7), %s776_s20, 4294966272  ;;  %p18_p9 = scmp.ge.s32.totalorder %s1363_s27, 4   ;;  %s1679_s15 = smov %s1262_s16 }
 0x26e   : > { %s1680_s16 = smov %s1266_s17  ;;  %s1681_s17 = smov %s1394_s24 }
 0x26f   : > { %s1682_s18 = smov %s1363_s27  ;;  %20 = sbr.rel (!%p18_p9) target bundleno = 6 (0x6), region = 88 }
 0x276   :  { %781 = vsyncpa [#allocation3], 1 }
 0x277   :  { %783 = vsyncpa [#allocation3 + $0x1], 1 }
 0x278   :  { %784 = vsyncpa [#allocation6], 1 }
 0x279   :  { %785 = vsyncpa [#allocation4], 1 }
 0x27a   :  { %787 = vsyncpa [#allocation4 + $0x1], 1 }

</bundles_post_ra>
